<compile_context>
chip_gen: v6e
topology: v6e:2x2x1
jax: 0.10.0
libtpu: 0.0.40
codegen_flags: <defaults>
</compile_context>

<pallas_src>
import jax
import jax.numpy as jnp
from jax.experimental import pallas as pl
from jax.experimental.pallas import tpu as pltpu

IN_F = 2
HID_F = 2
OUT_F = 2
SUB = 8          # sublane-aligned tile rows
LANE = 128       # lane-aligned tile cols
OUT_LANE = IN_F  # lane offset where W2^T columns / outputs live (lanes 2..3)


def _sigmoid(z):
    # Single EUP op (tanh) instead of exp + exact-reciprocal VALU Newton steps.
    return 0.5 * (jnp.tanh(0.5 * z) + 1.0)


def mlp_kernel(x_ref, b_ref, w_ref, o_ref):
    # x_ref: SMEM (2,)   f32 -- input features x0, x1
    # b_ref: SMEM (4,)   f32 -- [b1_0, b1_1, b2_0, b2_1] (both biases fused)
    # w_ref: VMEM (8,128) f32 fused weight tile:
    #          w_ref[m, i]            = W1[m, i]  for m, i < 2
    #          w_ref[j, OUT_LANE + k] = W2[k, j]  for j, k < 2
    #          zero everywhere else
    # o_ref: VMEM (1,128) f32 -- lanes OUT_LANE..OUT_LANE+1 hold the result
    lane = jax.lax.broadcasted_iota(jnp.int32, (1, LANE), 1)   # lane ids
    sub = jax.lax.broadcasted_iota(jnp.int32, (SUB, 1), 0)     # sublane ids

    w = w_ref[...]                                             # single 4 KiB load

    # Build the input row [x0, x1, 0, ...] directly from SMEM scalars (no x DMA).
    x_row = jnp.where(lane == 0, x_ref[0],
                      jnp.where(lane == 1, x_ref[1], 0.0))     # (1, 128)

    # Layer 1: contract over lanes (input features) -> one z per sublane (hidden unit).
    # x_row is zero at lanes >= 2, so the W2^T lanes of the fused tile contribute 0.
    z1 = jnp.sum(x_row * w, axis=1, keepdims=True)             # (8, 1)
    b1v = jnp.where(sub == 0, b_ref[0],
                    jnp.where(sub == 1, b_ref[1], 0.0))        # (8, 1)
    h = _sigmoid(z1 + b1v)                                     # (8, 1); rows>=2 are 0.5
    #                                                            (hit zero tile rows below)

    # Layer 2: contract over sublanes (hidden units) -> one z per lane.
    # Outputs land at lanes OUT_LANE..OUT_LANE+1 (where W2^T lives); other lanes are
    # garbage/zero and get sliced off in the wrapper.
    z2 = jnp.sum(h * w, axis=0, keepdims=True)                 # (1, 128)
    b2v = jnp.where(lane == OUT_LANE, b_ref[2],
                    jnp.where(lane == OUT_LANE + 1, b_ref[3], 0.0))
    o_ref[...] = _sigmoid(z2 + b2v)                            # lane-dense (1,128) store


def pack_params(w1, b1, w2, b2):
    """Pad/pack the constant parameters ONCE (hoisted off the per-call path).

    w1, w2: PyTorch-style (out_features, in_features) = (2, 2).  b1, b2: (2,).
    Returns one fused (8,128) weight tile and one (4,) bias vector.
    """
    w = jnp.zeros((SUB, LANE), jnp.float32)
    w = w.at[:HID_F, :IN_F].set(w1.astype(jnp.float32))                       # W1
    w = w.at[:HID_F, OUT_LANE:OUT_LANE + OUT_F].set(w2.T.astype(jnp.float32)) # W2^T
    bias = jnp.concatenate([b1, b2]).astype(jnp.float32)                      # (4,)
    return w, bias


@jax.jit
def net_forward(x, w_fused, bias):
    """x: (2,) f32.  w_fused/bias: outputs of pack_params (padded once)."""
    out_row = pl.pallas_call(
        mlp_kernel,
        out_shape=jax.ShapeDtypeStruct((1, LANE), jnp.float32),
        in_specs=[
            pl.BlockSpec(memory_space=pltpu.MemorySpace.SMEM),   # x     (2,)
            pl.BlockSpec(memory_space=pltpu.MemorySpace.SMEM),   # bias  (4,)
            pl.BlockSpec(memory_space=pltpu.MemorySpace.VMEM),   # fused W tile (8,128)
        ],
        out_specs=pl.BlockSpec(memory_space=pltpu.MemorySpace.VMEM),
    )(x.astype(jnp.float32), bias, w_fused)
    return out_row[0, OUT_LANE:OUT_LANE + OUT_F]
    # TODO(synk): the only real throughput lever is batching -- make x a
    # (B_pad, 128) VMEM input with B_pad a multiple of 8, batch along sublanes,
    # grid over B_pad with a large row tile, and dimension_semantics=("parallel",)
    # so the grid shards across v7x's two TensorCores.


if __name__ == "__main__":
    # Deterministic parameter init (PyTorch Linear default: U(-1/sqrt(fan_in), +)).
    key = jax.random.PRNGKey(0)
    k1, k2, k3, k4 = jax.random.split(key, 4)
    bound = 1.0 / jnp.sqrt(jnp.float32(IN_F))
    w1 = jax.random.uniform(k1, (HID_F, IN_F), jnp.float32, -bound, bound)
    b1 = jax.random.uniform(k2, (HID_F,), jnp.float32, -bound, bound)
    w2 = jax.random.uniform(k3, (OUT_F, HID_F), jnp.float32, -bound, bound)
    b2 = jax.random.uniform(k4, (OUT_F,), jnp.float32, -bound, bound)

    # Same input as the original script.
    x = jnp.array([0.05, 0.01], dtype=jnp.float32)

    # Pad/pack the constant parameters once, outside the per-call path.
    w_fused, bias = pack_params(w1, b1, w2, b2)

    out = net_forward(x, w_fused, bias)
    jax.block_until_ready(out)

    # Cross-check against a plain-JAX reference of the PyTorch forward.
    # Tolerance relaxed slightly vs. 1e-6 because the kernel uses the EUP tanh-based
    # sigmoid while the reference uses jax.nn.sigmoid (per review correctness note).
    ref = jax.nn.sigmoid(jax.nn.sigmoid(x @ w1.T + b1) @ w2.T + b2)
    assert jnp.allclose(out, ref, atol=1e-5), (out, ref)

    print("KERNEL_OK")
</pallas_src>

<mosaic_0001>
module attributes {stable_mosaic.version = 11 : i64} {
  func.func @mlp_kernel(%arg0: memref<2xf32, #tpu.memory_space<smem>>, %arg1: memref<4xf32, #tpu.memory_space<smem>>, %arg2: memref<8x128xf32, #tpu.memory_space<vmem>>, %arg3: memref<1x128xf32, #tpu.memory_space<vmem>>) attributes {dimension_semantics = [], scalar_prefetch = 0 : i64, scratch_operands = 0 : i64, tpu.core_type = #tpu.core_type<tc>} {
    %0 = tpu.iota {dimensions = array<i32: 1>} : vector<1x128xi32>
    %1 = tpu.iota {dimensions = array<i32: 0>} : vector<8x1xi32>
    %c0 = arith.constant 0 : index
    %c0_0 = arith.constant 0 : index
    %2 = vector.load %arg2[%c0, %c0_0] : memref<8x128xf32, #tpu.memory_space<vmem>>, vector<8x128xf32>
    %c0_i32 = arith.constant 0 : i32
    %3 = vector.broadcast %c0_i32 : i32 to vector<1x128xi32>
    %4 = arith.cmpi eq, %0, %3 : vector<1x128xi32>
    %c0_1 = arith.constant 0 : index
    %5 = memref.load %arg0[%c0_1] : memref<2xf32, #tpu.memory_space<smem>>
    %c1_i32 = arith.constant 1 : i32
    %6 = vector.broadcast %c1_i32 : i32 to vector<1x128xi32>
    %7 = arith.cmpi eq, %0, %6 : vector<1x128xi32>
    %c1 = arith.constant 1 : index
    %8 = memref.load %arg0[%c1] : memref<2xf32, #tpu.memory_space<smem>>
    %cst = arith.constant 0.000000e+00 : f32
    %9 = vector.broadcast %8 : f32 to vector<1x128xf32>
    %10 = vector.broadcast %cst : f32 to vector<1x128xf32>
    %11 = arith.select %7, %9, %10 : vector<1x128xi1>, vector<1x128xf32>
    %12 = vector.broadcast %5 : f32 to vector<1x128xf32>
    %13 = arith.select %4, %12, %11 : vector<1x128xi1>, vector<1x128xf32>
    %14 = vector.broadcast %13 : vector<1x128xf32> to vector<8x128xf32>
    %15 = arith.mulf %14, %2 : vector<8x128xf32>
    %cst_2 = arith.constant dense<0.000000e+00> : vector<8xf32>
    %16 = vector.multi_reduction <add>, %15, %cst_2 [1] : vector<8x128xf32> to vector<8xf32>
    %17 = vector.shape_cast %16 : vector<8xf32> to vector<8x1xf32>
    %c0_i32_3 = arith.constant 0 : i32
    %18 = vector.broadcast %c0_i32_3 : i32 to vector<8x1xi32>
    %19 = arith.cmpi eq, %1, %18 : vector<8x1xi32>
    %c0_4 = arith.constant 0 : index
    %20 = memref.load %arg1[%c0_4] : memref<4xf32, #tpu.memory_space<smem>>
    %c1_i32_5 = arith.constant 1 : i32
    %21 = vector.broadcast %c1_i32_5 : i32 to vector<8x1xi32>
    %22 = arith.cmpi eq, %1, %21 : vector<8x1xi32>
    %c1_6 = arith.constant 1 : index
    %23 = memref.load %arg1[%c1_6] : memref<4xf32, #tpu.memory_space<smem>>
    %cst_7 = arith.constant 0.000000e+00 : f32
    %24 = vector.broadcast %23 : f32 to vector<8x1xf32>
    %25 = vector.broadcast %cst_7 : f32 to vector<8x1xf32>
    %26 = arith.select %22, %24, %25 : vector<8x1xi1>, vector<8x1xf32>
    %27 = vector.broadcast %20 : f32 to vector<8x1xf32>
    %28 = arith.select %19, %27, %26 : vector<8x1xi1>, vector<8x1xf32>
    %29 = arith.addf %17, %28 : vector<8x1xf32>
    %cst_8 = arith.constant 5.000000e-01 : f32
    %30 = vector.broadcast %cst_8 : f32 to vector<8x1xf32>
    %31 = arith.mulf %30, %29 : vector<8x1xf32>
    %32 = math.tanh %31 : vector<8x1xf32>
    %cst_9 = arith.constant 1.000000e+00 : f32
    %33 = vector.broadcast %cst_9 : f32 to vector<8x1xf32>
    %34 = arith.addf %32, %33 : vector<8x1xf32>
    %cst_10 = arith.constant 5.000000e-01 : f32
    %35 = vector.broadcast %cst_10 : f32 to vector<8x1xf32>
    %36 = arith.mulf %35, %34 : vector<8x1xf32>
    %37 = vector.broadcast %36 : vector<8x1xf32> to vector<8x128xf32>
    %38 = arith.mulf %37, %2 : vector<8x128xf32>
    %cst_11 = arith.constant dense<0.000000e+00> : vector<128xf32>
    %39 = vector.multi_reduction <add>, %38, %cst_11 [0] : vector<8x128xf32> to vector<128xf32>
    %40 = vector.shape_cast %39 : vector<128xf32> to vector<1x128xf32>
    %c2_i32 = arith.constant 2 : i32
    %41 = vector.broadcast %c2_i32 : i32 to vector<1x128xi32>
    %42 = arith.cmpi eq, %0, %41 : vector<1x128xi32>
    %c2 = arith.constant 2 : index
    %43 = memref.load %arg1[%c2] : memref<4xf32, #tpu.memory_space<smem>>
    %c3_i32 = arith.constant 3 : i32
    %44 = vector.broadcast %c3_i32 : i32 to vector<1x128xi32>
    %45 = arith.cmpi eq, %0, %44 : vector<1x128xi32>
    %c3 = arith.constant 3 : index
    %46 = memref.load %arg1[%c3] : memref<4xf32, #tpu.memory_space<smem>>
    %cst_12 = arith.constant 0.000000e+00 : f32
    %47 = vector.broadcast %46 : f32 to vector<1x128xf32>
    %48 = vector.broadcast %cst_12 : f32 to vector<1x128xf32>
    %49 = arith.select %45, %47, %48 : vector<1x128xi1>, vector<1x128xf32>
    %50 = vector.broadcast %43 : f32 to vector<1x128xf32>
    %51 = arith.select %42, %50, %49 : vector<1x128xi1>, vector<1x128xf32>
    %52 = arith.addf %40, %51 : vector<1x128xf32>
    %cst_13 = arith.constant 5.000000e-01 : f32
    %53 = vector.broadcast %cst_13 : f32 to vector<1x128xf32>
    %54 = arith.mulf %53, %52 : vector<1x128xf32>
    %55 = math.tanh %54 : vector<1x128xf32>
    %cst_14 = arith.constant 1.000000e+00 : f32
    %56 = vector.broadcast %cst_14 : f32 to vector<1x128xf32>
    %57 = arith.addf %55, %56 : vector<1x128xf32>
    %cst_15 = arith.constant 5.000000e-01 : f32
    %58 = vector.broadcast %cst_15 : f32 to vector<1x128xf32>
    %59 = arith.mulf %58, %57 : vector<1x128xf32>
    %c0_16 = arith.constant 0 : index
    %c0_17 = arith.constant 0 : index
    %60 = vector.load %arg3[%c0_16, %c0_17] : memref<1x128xf32, #tpu.memory_space<vmem>>, vector<1x128xf32>
    tpu.vector_store %arg3[%c0_16, %c0_17], %59 {strides = array<i32>} : memref<1x128xf32, #tpu.memory_space<vmem>>, vector<1x128xf32>,
    return
  }
}

</mosaic_0001>

<bundles_post_ra>
// kernel: net_forward.1
= control target key start
LH: loop header
LB: loop body
LE: loop exit
PB: predicated region body
PF: predicated region fallthrough
CT: control target
= control target key end

     0   :  { %8 = vsyncpa [#allocation4], 0  ;;  %s198_s0 = inlined_call_operand.hbm [shape: f32[2], index: 0, kind: input, shape index: {}]   ;;  %s199_s1 = inlined_call_operand.vmem [shape: f32[4], index: 1, kind: input, shape index: {}]   ;;  %s200_s2 = inlined_call_operand.hbm [shape: f32[8,128], index: 2, kind: input, shape index: {}]   ;;  %s201_s3 = inlined_call_operand.vmem [shape: f32[1,128], index: 3, kind: output, shape index: {}]  }
   0x1   :  { %9 = vsyncpa [#allocation5], 0  ;;  %s25_s14 = sshll.u32 %s199_s1, 4  ;;  %s26_s14 = int_to_ptr.vmem [resolvable:$true] %s25_s14 }
   0x2   :  { %10 = vsyncpa [#allocation3], 0  ;;  %s163_s15 = smov [#allocation2]   ;;  %s125_s18 = scalar_lea.vmem %s26_s14, 16 }
   0x3   :  { %18 = dma.hbm_to_smem %s198_s0, 16, %s163_s15, [#allocation4]  }
   0x4   :  { %p126_p0 = scmp.ne.s32.totalorder %s26_s14, %s125_s18  ;;  %p130_p1 = scmp.lt.s32.totalorder %s26_s14, %s26_s14 }
   0x5   :  { %p131_p2 = scmp.lt.s32.totalorder %s125_s18, %s125_s18 }
   0x7   :  { %p132_p3 = por %p131_p2, %p130_p1 }
   0x9   :  { %p133_p4 = pnand %p132_p3, %p126_p0 }
   0xb   :  { %136 = shalt.err (!%p133_p4)
}
   0xc   :  { %s164_s19 = smov [#allocation6]   ;;  %s165_s20 = smov [#allocation7]  }
   0xd   :  { %28 = dma.vmem_to_smem %s26_s14, 16, %s164_s19, [#allocation5]  }
   0xe   :  { %s35_s21 = sshll.u32 %s165_s20, 4  ;;  %s36_s21 = int_to_ptr.vmem [resolvable:$true] %s35_s21 }
   0xf   :  { %s145_s1 = scalar_lea.vmem %s36_s21, 128  ;;  %p150_p6 = scmp.lt.s32.totalorder %s36_s21, %s36_s21 }
  0x10   :  { %p146_p5 = scmp.ne.s32.totalorder %s36_s21, %s145_s1  ;;  %p151_p7 = scmp.lt.s32.totalorder %s145_s1, %s145_s1 }
  0x12   :  { %p152_p8 = por %p151_p7, %p150_p6 }
  0x14   :  { %p153_p9 = pnand %p152_p8, %p146_p5 }
  0x16   :  { %156 = shalt.err (!%p153_p9)
}
  0x17   :  { %38 = dma.hbm_to_vmem [thread:$0]  %s200_s2, 128, %s36_s21, [#allocation3]  }
  0x18   :  { %157 = dma.done.wait [#allocation4], 16  }
  0x19   :  { %158 = vsyncadd [#allocation4], 4294967280 }
  0x1a   :  { %159 = dma.done.wait [#allocation5], 16  }
  0x1b   :  { %160 = vsyncadd [#allocation5], 4294967280 }
  0x1c   :  { %161 = dma.done.wait [#allocation3], 128  }
  0x1d   :  { %162 = vsyncadd [#allocation3], 4294967168 }
  0x1e   :  { %48 = sfence }
  0x1f   :  { %v49_v0 = vlaneseq  ;;  %s55_s23 = sld [smem:[#allocation2]]  ;;  %v53_v3 = vld [vmem:[#allocation7] sm:$0xff] }
  0x20   :  { %s106_s24 = sld [smem:[#allocation2 + $0x1]] }
  0x21   :  { %v50_v1 = vand.u32 127, %v49_v0  ;;  %s107_s2 = sld [smem:[#allocation6 + $0x1]]  ;;  %v52_v8 = vshrl.u32 %v49_v0, 7 }
  0x22   :  { %s66_s25 = sld [smem:[#allocation6]] }
  0x23   :  { %vm56_vm0 = vcmp.eq.s32.totalorder %v50_v1, 1  ;;  %vm54_vm1 = vcmp.eq.s32.totalorder %v50_v1, 0  ;;  %vm67_vm2 = vcmp.eq.s32.totalorder %v52_v8, 1  ;;  %vm65_vm3 = vcmp.eq.s32.totalorder %v52_v8, 0  ;;  %s109_s26 = sld [smem:[#allocation6 + $0x3]] }
  0x24   :  { %s108_s27 = sld [smem:[#allocation6 + $0x2]]  ;;  %vm87_vm4 = vcmp.eq.s32.totalorder %v50_v1, 3  ;;  %vm85_vm5 = vcmp.eq.s32.totalorder %v50_v1, 2 }
  0x25   :  { %v60_v2 = vstv %s55_s23 }
  0x26   :  { %v58_v4 = vstv %s106_s24 }
  0x27   :  { %v59_v5 = vsel %vm56_vm0, %v58_v4, 0.0  ;;  %v69_v9 = vstv %s107_s2 }
  0x28   :  { %v61_v6 = vsel %vm54_vm1, %v60_v2, %v59_v5  ;;  %v70_v10 = vsel %vm67_vm2, %v69_v9, 0.0  ;;  %v71_v11 = vstv %s66_s25 }
  0x29   :  { %v62_v7 = vmul.f32 %v61_v6, %v53_v3  ;;  %v72_v12 = vsel %vm65_vm3, %v71_v11, %v70_v10  ;;  %v89_v22 = vstv %s109_s26 }
  0x2a   :  { %v90_v25 = vsel %vm87_vm4, %v89_v22, 0.0  ;;  %v91_v26 = vstv %s108_s27 }
  0x2b   :  { %63 = vadd.xlane.f32.xlu0 %v62_v7  ;;  %v92_v28 = vsel %vm85_vm5, %v91_v26, %v90_v25 }
  0xb4   :  { %v64_v13 = vpop.xlane.xlu0 %63 }
  0xb5   :  { %v73_v14 = vadd.f32 %v72_v12, %v64_v13 }
  0xb7   :  { %v74_v15 = vmul.f32 0.5, %v73_v14 }
  0xb9   :  { %113 = vtanh.f32 %v74_v15 }
  0xc6   :  { %v114_v16 = vpop.eup %113 }
  0xc7   :  { %v76_v17 = vadd.f32 1.0, %v114_v16 }
  0xc9   :  { %v77_v18 = vmul.f32 0.5, %v76_v17 }
  0xcb   :  { %v78_v19 = vmul.f32 %v77_v18, %v53_v3 }
  0xcd   :  { %v79_v20 = vrot.slane %v78_v19, 4 }
  0xcf   :  { %v80_v21 = vadd.f32 %v79_v20, %v78_v19 }
  0xd1   :  { %v81_v23 = vrot.slane %v80_v21, 2 }
  0xd3   :  { %v82_v24 = vadd.f32 %v81_v23, %v80_v21 }
  0xd5   :  { %v83_v27 = vrot.slane %v82_v24, 1 }
  0xd7   :  { %v84_v29 = vadd.f32 %v83_v27, %v82_v24 }
  0xd9   :  { %v93_v30 = vadd.f32 %v92_v28, %v84_v29 }
  0xdb   :  { %v94_v31 = vmul.f32 0.5, %v93_v30 }
  0xdd   :  { %115 = vtanh.f32 %v94_v31 }
  0xea   :  { %v116_v32 = vpop.eup %115 }
  0xeb   :  { %v96_v33 = vadd.f32 1.0, %v116_v32 }
  0xed   :  { %v97_v34 = vmul.f32 0.5, %v96_v33 }
  0xef   :  { %98 = vst [vmem:[%s201_s3] sm:$0x1] %v97_v34 }
  0xf0   :  { %103 = vsyncpa [#allocation3], 1 }
  0xf1   :  { %104 = vsyncpa [#allocation4], 1 }
  0xf2   :  { %105 = vsyncpa [#allocation5], 1 }

</bundles_post_ra>
